<compile_context>
chip_gen: v7x
topology: tpu7x:2x2x1
jax: 0.10.0
libtpu: 0.0.40
codegen_flags: <defaults>
</compile_context>

<pallas_src>
import jax
import jax.numpy as jnp
from jax.experimental import pallas as pl
from jax.experimental.pallas import tpu as pltpu

_LANE = 128     # TPU lane width: every layer width is padded to this
_TB = 8         # batch rows per grid block (one f32 sublane group)


def _round_up(n, m):
    return (n + m - 1) // m * m


def _vmem_capacity_bytes():
    """Physical VMEM of the current chip (conservative fallback)."""
    try:
        return int(pltpu.get_tpu_info().vmem_capacity_bytes)
    except Exception:
        return 64 * 1024 * 1024  # v7x per-TC size: safe lower bound


# ----------------------------------------------------------------------------
# Kernel
# ----------------------------------------------------------------------------
def _action_mlp_kernel(x_ref, w1_ref, wt_ref, b_ref, o_ref, acc_ref):
    """4-layer MLP with K-tiled layer 1.

    Grid = (nb, nk); the K axis (last, 'arbitrary') accumulates layer 1.

    x_ref  : (_TB, tk)        x dtype, batch rows x one K tile of the input
    w1_ref : (tk, 128)        weight dtype, one K tile of W1
    wt_ref : (384, 128)       weight dtype, [W2; W3; W4] zero-padded, resident
    b_ref  : (4, 128)         f32, row i = bias of layer i (zero-padded)
    o_ref  : (_TB, 128)       f32, result for row r lives at [r, 0]
    acc_ref: (_TB, 128)       f32 scratch, layer-1 accumulator
    """
    k = pl.program_id(1)

    @pl.when(k == 0)
    def _():
        acc_ref[...] = jnp.zeros_like(acc_ref)

    # layer 1 partial product: (_TB, tk) @ (tk, 128) -> f32 accumulate
    acc_ref[...] += jnp.dot(x_ref[...], w1_ref[...],
                            preferred_element_type=jnp.float32)

    @pl.when(k == pl.num_programs(1) - 1)
    def _():
        wdt = wt_ref.dtype
        # layer 1 bias + ReLU
        h = jnp.maximum(acc_ref[...] + b_ref[0:1, :], 0.0).astype(wdt)
        # layer 2: true 128 -> 64 (padded to 128), ReLU
        h = jnp.maximum(
            jnp.dot(h, wt_ref[pl.ds(0, _LANE), :],
                    preferred_element_type=jnp.float32) + b_ref[1:2, :],
            0.0).astype(wdt)
        # layer 3: true 64 -> 32 (padded to 128), ReLU
        h = jnp.maximum(
            jnp.dot(h, wt_ref[pl.ds(_LANE, _LANE), :],
                    preferred_element_type=jnp.float32) + b_ref[2:3, :],
            0.0).astype(wdt)
        # layer 4: true 32 -> 1 (padded to 128), no activation
        o_ref[...] = (jnp.dot(h, wt_ref[pl.ds(2 * _LANE, _LANE), :],
                              preferred_element_type=jnp.float32)
                      + b_ref[3:4, :])


# ----------------------------------------------------------------------------
# Parameter init / packing
# ----------------------------------------------------------------------------
def init_action_network_params(key, input_size):
    """Deterministic init mirroring nn.Linear default U[-1/sqrt(in), 1/sqrt(in)].

    Returns per-layer (W:(in,out), b:(out,)) params (un-padded, un-packed).
    """
    sizes = [(input_size, 128), (128, 64), (64, 32), (32, 1)]
    params = []
    for (fan_in, fan_out) in sizes:
        key, kw, kb = jax.random.split(key, 3)
        bound = 1.0 / (fan_in ** 0.5)
        w = jax.random.uniform(kw, (fan_in, fan_out), jnp.float32, -bound, bound)
        b = jax.random.uniform(kb, (fan_out,), jnp.float32, -bound, bound)
        params.append((w, b))
    return params


def pack_action_network_params(params, input_size, *,
                               weight_dtype=jnp.bfloat16, tk=512):
    """Pack parameters into lane-dense slabs for the kernel.

    w1 : (d_pad, 128)  weight_dtype   layer-1 weights, zero-padded, K-tiled
    wt : (384, 128)    weight_dtype   [W2; W3; W4] zero-padded, resident
    b  : (4, 128)      f32            row i = bias of layer i (zero-padded)
    """
    (w1, b1), (w2, b2), (w3, b3), (w4, b4) = params

    tk = max(_LANE, _round_up(int(tk), _LANE))
    tk_eff = min(tk, _round_up(input_size, _LANE))
    d_pad = _round_up(input_size, tk_eff)

    w1_slab = jnp.zeros((d_pad, _LANE), weight_dtype)
    w1_slab = w1_slab.at[:input_size, :w1.shape[1]].set(w1.astype(weight_dtype))

    wt_slab = jnp.zeros((3 * _LANE, _LANE), weight_dtype)
    wt_slab = wt_slab.at[0:w2.shape[0], :w2.shape[1]].set(w2.astype(weight_dtype))
    wt_slab = wt_slab.at[_LANE:_LANE + w3.shape[0], :w3.shape[1]].set(
        w3.astype(weight_dtype))
    wt_slab = wt_slab.at[2 * _LANE:2 * _LANE + w4.shape[0], :w4.shape[1]].set(
        w4.astype(weight_dtype))

    b_slab = jnp.zeros((4, _LANE), jnp.float32)
    b_slab = b_slab.at[0, :b1.shape[0]].set(b1.astype(jnp.float32))
    b_slab = b_slab.at[1, :b2.shape[0]].set(b2.astype(jnp.float32))
    b_slab = b_slab.at[2, :b3.shape[0]].set(b3.astype(jnp.float32))
    b_slab = b_slab.at[3, :b4.shape[0]].set(b4.astype(jnp.float32))

    return {"w1": w1_slab, "wt": wt_slab, "b": b_slab,
            "d_pad": d_pad, "tk": tk_eff, "input_size": input_size}


# ----------------------------------------------------------------------------
# Forward wrappers
# ----------------------------------------------------------------------------
def action_network_forward_batched(h_batch, packed):
    """Batched forward: h_batch (B, *state_shape) -> (B, 1).

    Each state is flattened independently (same per-state semantics as the
    PyTorch module); up to 8 states share the sublane rows of each MXU pass.
    """
    w1, wt, b_slab = packed["w1"], packed["wt"], packed["b"]
    d_pad, tk, input_size = packed["d_pad"], packed["tk"], packed["input_size"]
    wdt = w1.dtype
    itemsize_w = jnp.dtype(wdt).itemsize

    B = h_batch.shape[0]
    x = jnp.reshape(h_batch, (B, -1)).astype(wdt)
    assert x.shape[1] == input_size, (x.shape, input_size)

    B_pad = _round_up(B, _TB)
    x = jnp.pad(x, ((0, B_pad - B), (0, d_pad - input_size)))

    nb = B_pad // _TB
    nk = d_pad // tk

    # --- advisory cost estimate (padded shapes) ---
    flops = 2 * B_pad * _LANE * (d_pad + 3 * _LANE)
    bytes_accessed = ((x.size + w1.size + wt.size) * itemsize_w
                      + (b_slab.size + B_pad * _LANE) * 4)

    # --- VMEM limit: actual per-step working set + slack, capped at 3/4 of
    #     physical VMEM (generation-aware; no 32 MiB floor, no >64 MiB ask).
    per_step = (2 * (_TB * tk * itemsize_w            # x block (dbl-buffered)
                     + tk * _LANE * itemsize_w        # W1 block
                     + 3 * _LANE * _LANE * itemsize_w # resident tail slab
                     + 4 * _LANE * 4                  # bias slab
                     + _TB * _LANE * 4)               # output block
                + _TB * _LANE * 4)                    # f32 accumulator scratch
    vmem_limit = int(min(per_step + 4 * 1024 * 1024,
                         (_vmem_capacity_bytes() * 3) // 4))

    out = pl.pallas_call(
        _action_mlp_kernel,
        out_shape=jax.ShapeDtypeStruct((B_pad, _LANE), jnp.float32),
        grid_spec=pltpu.PrefetchScalarGridSpec(
            num_scalar_prefetch=0,
            grid=(nb, nk),
            in_specs=[
                pl.BlockSpec((_TB, tk), lambda bi, ki: (bi, ki)),        # x
                pl.BlockSpec((tk, _LANE), lambda bi, ki: (ki, 0)),       # W1
                pl.BlockSpec((3 * _LANE, _LANE), lambda bi, ki: (0, 0)), # tail
                pl.BlockSpec((4, _LANE), lambda bi, ki: (0, 0)),         # bias
            ],
            out_specs=pl.BlockSpec((_TB, _LANE), lambda bi, ki: (bi, 0)),
            scratch_shapes=[pltpu.VMEM((_TB, _LANE), jnp.float32)],
        ),
        cost_estimate=pl.CostEstimate(flops=flops, transcendentals=0,
                                      bytes_accessed=bytes_accessed),
        compiler_params=pltpu.CompilerParams(
            dimension_semantics=("parallel", "arbitrary"),
            vmem_limit_bytes=vmem_limit),
    )(x, w1, wt, b_slab)

    return out[:B, 0:1]  # (B, 1)


def action_network_forward(h_t, packed):
    """Module-semantics forward: flatten(start_dim=0) -> scalar, shape (1,)."""
    out = action_network_forward_batched(jnp.reshape(h_t, (1, -1)), packed)
    return out[0]  # shape (1,), matches PyTorch


# ----------------------------------------------------------------------------
# Plain-JAX reference (mirrors the PyTorch module) for sanity checking
# ----------------------------------------------------------------------------
def _reference_forward(h_t, params):
    x = jnp.reshape(h_t, (-1,)).astype(jnp.float32)
    (w1, b1), (w2, b2), (w3, b3), (w4, b4) = params
    hp = jax.lax.Precision.HIGHEST
    h = jnp.maximum(jnp.dot(x, w1, precision=hp) + b1, 0.0)
    h = jnp.maximum(jnp.dot(h, w2, precision=hp) + b2, 0.0)
    h = jnp.maximum(jnp.dot(h, w3, precision=hp) + b3, 0.0)
    return jnp.dot(h, w4, precision=hp) + b4


if __name__ == "__main__":
    key = jax.random.PRNGKey(0)
    k_in, k_params, k_batch, k_big_in, k_big_params = jax.random.split(key, 5)

    # --- small module-shaped test: h_t (2, 16) -> input_size 32 -------------
    h_t = jax.random.normal(k_in, (2, 16), dtype=jnp.float32)
    input_size = h_t.size
    params = init_action_network_params(k_params, input_size)

    # f32 weight path (exact test path)
    packed_f32 = pack_action_network_params(params, input_size,
                                            weight_dtype=jnp.float32)
    a_t = jax.block_until_ready(action_network_forward(h_t, packed_f32))
    ref = _reference_forward(h_t, params)
    assert a_t.shape == (1,), a_t.shape
    assert jnp.allclose(a_t, ref, atol=1e-5, rtol=1e-5), (a_t, ref)

    # bf16 weight path (memory-bound fast path; f32 accumulation)
    packed_bf16 = pack_action_network_params(params, input_size,
                                             weight_dtype=jnp.bfloat16)
    a_t_bf16 = jax.block_until_ready(action_network_forward(h_t, packed_bf16))
    assert a_t_bf16.shape == (1,), a_t_bf16.shape
    assert jnp.allclose(a_t_bf16, ref, atol=5e-2, rtol=5e-2), (a_t_bf16, ref)

    # --- batched: 8 independent states ride the 8 sublane rows for free -----
    h_batch = jax.random.normal(k_batch, (8, 2, 16), dtype=jnp.float32)
    a_batch = jax.block_until_ready(
        action_network_forward_batched(h_batch, packed_f32))
    assert a_batch.shape == (8, 1), a_batch.shape
    ref_batch = jnp.stack([_reference_forward(h_batch[i], params)
                           for i in range(8)])
    assert jnp.allclose(a_batch, ref_batch, atol=1e-5, rtol=1e-5), (
        a_batch, ref_batch)

    # --- larger input exercises the K-tiled layer-1 grid (nk > 1) -----------
    big_input_size = 1200
    h_big = jax.random.normal(k_big_in, (big_input_size,), dtype=jnp.float32)
    big_params = init_action_network_params(k_big_params, big_input_size)
    packed_big = pack_action_network_params(big_params, big_input_size,
                                            weight_dtype=jnp.float32, tk=512)
    a_big = jax.block_until_ready(action_network_forward(h_big, packed_big))
    ref_big = _reference_forward(h_big, big_params)
    assert a_big.shape == (1,), a_big.shape
    assert jnp.allclose(a_big, ref_big, atol=1e-4, rtol=1e-4), (a_big, ref_big)

    print("KERNEL_OK")
</pallas_src>

<mosaic_0001>
module attributes {stable_mosaic.version = 11 : i64} {
  func.func @_action_mlp_kernel(%arg0: i32, %arg1: i32, %arg2: memref<8x128xf32, #tpu.memory_space<vmem>>, %arg3: memref<128x128xf32, #tpu.memory_space<vmem>>, %arg4: memref<384x128xf32, #tpu.memory_space<vmem>>, %arg5: memref<4x128xf32, #tpu.memory_space<vmem>>, %arg6: memref<8x128xf32, #tpu.memory_space<vmem>>, %arg7: memref<8x128xf32, #tpu.memory_space<vmem>>) attributes {dimension_semantics = [#tpu.dimension_semantics<parallel>, #tpu.dimension_semantics<arbitrary>], iteration_bounds = array<i64: 1, 1>, scalar_prefetch = 0 : i64, scratch_operands = 1 : i64, tpu.core_type = #tpu.core_type<tc>, window_params = [{transform_indices = @transform_0, window_bounds = array<i64: 8, 128>}, {transform_indices = @transform_1, window_bounds = array<i64: 128, 128>}, {pipeline_mode = #tpu.pipeline_mode<synchronous>, transform_indices = @transform_2, window_bounds = array<i64: 384, 128>}, {pipeline_mode = #tpu.pipeline_mode<synchronous>, transform_indices = @transform_3, window_bounds = array<i64: 4, 128>}, {transform_indices = @transform_4, window_bounds = array<i64: 8, 128>}]} {
    %c0_i32 = arith.constant 0 : i32
    %0 = arith.cmpi eq, %arg1, %c0_i32 : i32
    %1 = arith.extui %0 : i1 to i32
    %c0_i32_0 = arith.constant 0 : i32
    %2 = arith.cmpi ne, %1, %c0_i32_0 : i32
    scf.if %2 {
      %cst_10 = arith.constant 0.000000e+00 : f32
      %12 = vector.broadcast %cst_10 : f32 to vector<8x128xf32>
      %c0_11 = arith.constant 0 : index
      %c0_12 = arith.constant 0 : index
      %13 = vector.load %arg7[%c0_11, %c0_12] : memref<8x128xf32, #tpu.memory_space<vmem>>, vector<8x128xf32>
      tpu.vector_store %arg7[%c0_11, %c0_12], %12 {strides = array<i32>} : memref<8x128xf32, #tpu.memory_space<vmem>>, vector<8x128xf32>,
    } else {
    }
    %c0 = arith.constant 0 : index
    %c0_1 = arith.constant 0 : index
    %3 = vector.load %arg7[%c0, %c0_1] : memref<8x128xf32, #tpu.memory_space<vmem>>, vector<8x128xf32>
    %c0_2 = arith.constant 0 : index
    %c0_3 = arith.constant 0 : index
    %4 = vector.load %arg2[%c0_2, %c0_3] : memref<8x128xf32, #tpu.memory_space<vmem>>, vector<8x128xf32>
    %c0_4 = arith.constant 0 : index
    %c0_5 = arith.constant 0 : index
    %5 = vector.load %arg3[%c0_4, %c0_5] : memref<128x128xf32, #tpu.memory_space<vmem>>, vector<128x128xf32>
    %cst = arith.constant dense<0.000000e+00> : vector<8x128xf32>
    %6 = tpu.matmul %4, %5, %cst {dimension_numbers = #tpu.dot_dimension_numbers<[1], [0], [0], [1], [0, 0, 1, 1], [], []>} : vector<8x128xf32>, vector<128x128xf32>, vector<8x128xf32> -> vector<8x128xf32>
    %7 = arith.addf %3, %6 : vector<8x128xf32>
    %c0_6 = arith.constant 0 : index
    %c0_7 = arith.constant 0 : index
    %8 = vector.load %arg7[%c0_6, %c0_7] : memref<8x128xf32, #tpu.memory_space<vmem>>, vector<8x128xf32>
    tpu.vector_store %arg7[%c0_6, %c0_7], %7 {strides = array<i32>} : memref<8x128xf32, #tpu.memory_space<vmem>>, vector<8x128xf32>,
    %c0_i32_8 = arith.constant 0 : i32
    %9 = arith.cmpi eq, %arg1, %c0_i32_8 : i32
    %10 = arith.extui %9 : i1 to i32
    %c0_i32_9 = arith.constant 0 : i32
    %11 = arith.cmpi ne, %10, %c0_i32_9 : i32
    scf.if %11 {
      %c0_10 = arith.constant 0 : index
      %c0_11 = arith.constant 0 : index
      %12 = vector.load %arg7[%c0_10, %c0_11] : memref<8x128xf32, #tpu.memory_space<vmem>>, vector<8x128xf32>
      %c0_12 = arith.constant 0 : index
      %c0_13 = arith.constant 0 : index
      %13 = vector.load %arg5[%c0_12, %c0_13] : memref<4x128xf32, #tpu.memory_space<vmem>>, vector<1x128xf32>
      %14 = vector.broadcast %13 : vector<1x128xf32> to vector<8x128xf32>
      %15 = arith.addf %12, %14 : vector<8x128xf32>
      %cst_14 = arith.constant 0.000000e+00 : f32
      %16 = vector.broadcast %cst_14 : f32 to vector<8x128xf32>
      %17 = arith.maximumf %15, %16 : vector<8x128xf32>
      %c0_15 = arith.constant 0 : index
      %c0_16 = arith.constant 0 : index
      %18 = vector.load %arg4[%c0_15, %c0_16] : memref<384x128xf32, #tpu.memory_space<vmem>>, vector<128x128xf32>
      %cst_17 = arith.constant dense<0.000000e+00> : vector<8x128xf32>
      %19 = tpu.matmul %17, %18, %cst_17 {dimension_numbers = #tpu.dot_dimension_numbers<[1], [0], [0], [1], [0, 0, 1, 1], [], []>} : vector<8x128xf32>, vector<128x128xf32>, vector<8x128xf32> -> vector<8x128xf32>
      %c1 = arith.constant 1 : index
      %c0_18 = arith.constant 0 : index
      %20 = vector.load %arg5[%c1, %c0_18] : memref<4x128xf32, #tpu.memory_space<vmem>>, vector<1x128xf32>
      %21 = vector.broadcast %20 : vector<1x128xf32> to vector<8x128xf32>
      %22 = arith.addf %19, %21 : vector<8x128xf32>
      %cst_19 = arith.constant 0.000000e+00 : f32
      %23 = vector.broadcast %cst_19 : f32 to vector<8x128xf32>
      %24 = arith.maximumf %22, %23 : vector<8x128xf32>
      %c128 = arith.constant 128 : index
      %c0_20 = arith.constant 0 : index
      %25 = vector.load %arg4[%c128, %c0_20] : memref<384x128xf32, #tpu.memory_space<vmem>>, vector<128x128xf32>
      %cst_21 = arith.constant dense<0.000000e+00> : vector<8x128xf32>
      %26 = tpu.matmul %24, %25, %cst_21 {dimension_numbers = #tpu.dot_dimension_numbers<[1], [0], [0], [1], [0, 0, 1, 1], [], []>} : vector<8x128xf32>, vector<128x128xf32>, vector<8x128xf32> -> vector<8x128xf32>
      %c2 = arith.constant 2 : index
      %c0_22 = arith.constant 0 : index
      %27 = vector.load %arg5[%c2, %c0_22] : memref<4x128xf32, #tpu.memory_space<vmem>>, vector<1x128xf32>
      %28 = vector.broadcast %27 : vector<1x128xf32> to vector<8x128xf32>
      %29 = arith.addf %26, %28 : vector<8x128xf32>
      %cst_23 = arith.constant 0.000000e+00 : f32
      %30 = vector.broadcast %cst_23 : f32 to vector<8x128xf32>
      %31 = arith.maximumf %29, %30 : vector<8x128xf32>
      %c256 = arith.constant 256 : index
      %c0_24 = arith.constant 0 : index
      %32 = vector.load %arg4[%c256, %c0_24] : memref<384x128xf32, #tpu.memory_space<vmem>>, vector<128x128xf32>
      %cst_25 = arith.constant dense<0.000000e+00> : vector<8x128xf32>
      %33 = tpu.matmul %31, %32, %cst_25 {dimension_numbers = #tpu.dot_dimension_numbers<[1], [0], [0], [1], [0, 0, 1, 1], [], []>} : vector<8x128xf32>, vector<128x128xf32>, vector<8x128xf32> -> vector<8x128xf32>
      %c3 = arith.constant 3 : index
      %c0_26 = arith.constant 0 : index
      %34 = vector.load %arg5[%c3, %c0_26] : memref<4x128xf32, #tpu.memory_space<vmem>>, vector<1x128xf32>
      %35 = vector.broadcast %34 : vector<1x128xf32> to vector<8x128xf32>
      %36 = arith.addf %33, %35 : vector<8x128xf32>
      %c0_27 = arith.constant 0 : index
      %c0_28 = arith.constant 0 : index
      %37 = vector.load %arg6[%c0_27, %c0_28] : memref<8x128xf32, #tpu.memory_space<vmem>>, vector<8x128xf32>
      tpu.vector_store %arg6[%c0_27, %c0_28], %36 {strides = array<i32>} : memref<8x128xf32, #tpu.memory_space<vmem>>, vector<8x128xf32>,
    } else {
    }
    return
  }
  func.func @transform_0(%arg0: i32, %arg1: i32) -> (i32, i32) {
    %c0_i32 = arith.constant 0 : i32
    return %arg0, %arg1 : i32, i32
  }
  func.func @transform_1(%arg0: i32, %arg1: i32) -> (i32, i32) {
    %c0_i32 = arith.constant 0 : i32
    %c0_i32_0 = arith.constant 0 : i32
    return %arg1, %c0_i32 : i32, i32
  }
  func.func @transform_2(%arg0: i32, %arg1: i32) -> (i32, i32) {
    %c0_i32 = arith.constant 0 : i32
    %c0_i32_0 = arith.constant 0 : i32
    %c0_i32_1 = arith.constant 0 : i32
    return %c0_i32, %c0_i32_0 : i32, i32
  }
  func.func @transform_3(%arg0: i32, %arg1: i32) -> (i32, i32) {
    %c0_i32 = arith.constant 0 : i32
    %c0_i32_0 = arith.constant 0 : i32
    %c0_i32_1 = arith.constant 0 : i32
    return %c0_i32, %c0_i32_0 : i32, i32
  }
  func.func @transform_4(%arg0: i32, %arg1: i32) -> (i32, i32) {
    %c0_i32 = arith.constant 0 : i32
    %c0_i32_0 = arith.constant 0 : i32
    return %arg0, %c0_i32 : i32, i32
  }
}

</mosaic_0001>

<bundles_post_ra>
// kernel: tpu_custom_call.1
= control target key start
LH: loop header
LB: loop body
LE: loop exit
PB: predicated region body
PF: predicated region fallthrough
CT: control target
= control target key end

     0   :  { %9 = vsyncpa [#allocation4], 0  ;;  %s1006_s0 = inlined_call_operand.hbm [shape: f32[8,128], index: 0, kind: input, shape index: {}]   ;;  %s1007_s1 = inlined_call_operand.hbm [shape: f32[128,128], index: 1, kind: input, shape index: {}]   ;;  %s1008_s2 = inlined_call_operand.hbm [shape: f32[384,128], index: 2, kind: input, shape index: {}]   ;;  %s1009_s3 = inlined_call_operand.vmem [shape: f32[4,128], index: 3, kind: input, shape index: {}]   ;;  %s1010_s4 = inlined_call_operand.hbm [shape: f32[8,128], index: 4, kind: output, shape index: {}]  }
   0x1   :  { %10 = vsyncpa [#allocation7], 0 }
   0x2   :  { %11 = vsyncpa [#allocation5], 0  ;;  %s866_s15 = smov [#allocation6]   ;;  %s772_s19 = scalar_lea.hbm %s1007_s1, 2048 }
   0x3   :  { %s27_s16 = sshll.u32 %s866_s15, 4  ;;  %p773_p0 = scmp.ne.s32.totalorder %s1007_s1, %s772_s19  ;;  %s28_s16 = int_to_ptr.vmem [resolvable:$true] %s27_s16 }
   0x4   :  { %p776_p1 = scmp.lt.u32.totalorder %s772_s19, %s1007_s1 }
   0x6   :  { %p778_p2 = pnand %p776_p1, %p773_p0 }
   0x8   :  { %781 = shalt.err (!%p778_p2)
}
   0x9   :  { %s782_s24 = scalar_lea.vmem %s28_s16, 2048  ;;  %p787_p4 = scmp.lt.s32.totalorder %s28_s16, %s28_s16 }
   0xa   :  { %p783_p3 = scmp.ne.s32.totalorder %s28_s16, %s782_s24  ;;  %p788_p5 = scmp.lt.s32.totalorder %s782_s24, %s782_s24 }
   0xc   :  { %p789_p6 = por %p788_p5, %p787_p4 }
   0xe   :  { %p790_p7 = pnand %p789_p6, %p783_p3 }
  0x10   :  { %793 = shalt.err (!%p790_p7)
}
  0x11   :  { %s867_s25 = smov 128   ;;  %s868_s26 = smov 8  }
  0x12   :  { %33 = dma.hbm_to_vmem [thread:$0]  %s1007_s1, 2048, %s28_s16, [#allocation7], %s867_s25, %s867_s25, %s868_s26  }
  0x13   :  { %s869_s29 = smov [#allocation3]   ;;  %s870_s5 = smov [#allocation8]  }
  0x14   :  { %s18_s30 = sshll.u32 %s869_s29, 4  ;;  %s39_s6 = sshll.u32 %s870_s5, 4  ;;  %s19_s30 = int_to_ptr.vmem [resolvable:$true] %s18_s30  ;;  %s40_s6 = int_to_ptr.vmem [resolvable:$true] %s39_s6 }
  0x15   :  { %s794_s9 = scalar_lea.hbm %s1006_s0, 128 }
  0x16   :  { %p795_p8 = scmp.ne.s32.totalorder %s1006_s0, %s794_s9  ;;  %p798_p9 = scmp.lt.u32.totalorder %s794_s9, %s1006_s0 }
  0x18   :  { %p800_p10 = pnand %p798_p9, %p795_p8 }
  0x1a   :  { %803 = shalt.err (!%p800_p10)
}
  0x1b   :  { %s804_s1 = scalar_lea.vmem %s19_s30, 128  ;;  %p809_p12 = scmp.lt.s32.totalorder %s19_s30, %s19_s30 }
  0x1c   :  { %p805_p11 = scmp.ne.s32.totalorder %s19_s30, %s804_s1  ;;  %p810_p13 = scmp.lt.s32.totalorder %s804_s1, %s804_s1 }
  0x1e   :  { %p811_p0 = por %p810_p13, %p809_p12 }
  0x20   :  { %p812_p1 = pnand %p811_p0, %p805_p11 }
  0x22   :  { %815 = shalt.err (!%p812_p1)
}
  0x23   :  { %21 = dma.hbm_to_vmem [thread:$0]  %s1006_s0, 128, %s19_s30, [#allocation4]  }
  0x24   :  { %s816_s18 = scalar_lea.hbm %s1008_s2, 6144 }
  0x25   :  { %p817_p2 = scmp.ne.s32.totalorder %s1008_s2, %s816_s18  ;;  %p820_p3 = scmp.lt.u32.totalorder %s816_s18, %s1008_s2 }
  0x27   :  { %p822_p4 = pnand %p820_p3, %p817_p2 }
  0x29   :  { %825 = shalt.err (!%p822_p4)
}
  0x2a   :  { %s826_s23 = scalar_lea.vmem %s40_s6, 6144  ;;  %p831_p6 = scmp.lt.s32.totalorder %s40_s6, %s40_s6 }
  0x2b   :  { %p827_p5 = scmp.ne.s32.totalorder %s40_s6, %s826_s23  ;;  %p832_p7 = scmp.lt.s32.totalorder %s826_s23, %s826_s23 }
  0x2d   :  { %p833_p8 = por %p832_p7, %p831_p6 }
  0x2f   :  { %p834_p9 = pnand %p833_p8, %p827_p5 }
  0x31   :  { %837 = shalt.err (!%p834_p9)
}
  0x32   :  { %45 = dma.hbm_to_vmem [thread:$0]  %s1008_s2, 6144, %s40_s6, [#allocation7], %s867_s25, %s867_s25, %s868_s26  }
  0x33   :  { %860 = dma.done.wait [#allocation4], 128  }
  0x34   :  { %861 = vsyncadd [#allocation4], 4294967168 }
  0x35   :  { %862 = dma.done.wait [#allocation7], 8192  }
  0x36   :  { %863 = vsyncadd [#allocation7], 4294959104  ;;  %v871_v0 = vmov 0.0|0.0   ;;  %vm872_vm0 = vmmov 0   ;;  %v873_v1 = vmov 0.0   ;;  %v64_v2 = vld [vmem:[#allocation6] sm:$0xff] }
  0x37   :  { %667 = vmatprep.subr.bf16.mxu0 %v871_v0  ;;  %559 = vmatprep.mubr.msk.f32.mxu0 %vm872_vm0, %v873_v1  ;;  %v65_v3 = vld [vmem:[#allocation6 + $0x8] sm:$0xff]  ;;  %v66_v4 = vld [vmem:[#allocation6 + $0x10] sm:$0xff]  ;;  %v67_v6 = vld [vmem:[#allocation6 + $0x18] sm:$0xff]  ;;  %s874_s6 = smov [#allocation9]  }
  0x38   :  { %691 = vmatprep.subr.bf16.mxu1 %v871_v0  ;;  %594 = vmatprep.mubr.msk.f32.mxu1 %vm872_vm0, %v873_v1  ;;  %v668_v5 = vpack.c.bf16 %v65_v3, %v64_v2  ;;  %v671_v7 = vpack.c.bf16 %v67_v6, %v66_v4  ;;  %v68_v8 = vld [vmem:[#allocation6 + $0x20] sm:$0xff]  ;;  %v69_v9 = vld [vmem:[#allocation6 + $0x28] sm:$0xff]  ;;  %v165_v12 = vld [vmem:[#allocation8 + $0x10] sm:$0xff]  ;;  %s445_s7 = sshll.u32 %s874_s6, 4  ;;  %s446_s7 = int_to_ptr.vmem [resolvable:$true] %s445_s7 }
  0x39   :  { %v163_v10 = vld [vmem:[#allocation8] sm:$0xff]  ;;  %v164_v11 = vld [vmem:[#allocation8 + $0x8] sm:$0xff]  ;;  %v166_v13 = vld [vmem:[#allocation8 + $0x18] sm:$0xff]  ;;  %v674_v14 = vpack.c.bf16 %v69_v9, %v68_v8  ;;  %s838_s8 = scalar_lea.vmem %s446_s7, 128  ;;  %p843_p11 = scmp.lt.s32.totalorder %s446_s7, %s446_s7 }
  0x3a   :  { %669 = vmatpush3.bf16.msra.mxu0 %v668_v5  ;;  %v692_v15 = vpack.c.bf16 %v164_v11, %v163_v10  ;;  %v70_v16 = vld [vmem:[#allocation6 + $0x30] sm:$0xff]  ;;  %v71_v17 = vld [vmem:[#allocation6 + $0x38] sm:$0xff]  ;;  %v695_v18 = vpack.c.bf16 %v166_v13, %v165_v12  ;;  %v167_v19 = vld [vmem:[#allocation8 + $0x20] sm:$0xff]  ;;  %p839_p10 = scmp.ne.s32.totalorder %s446_s7, %s838_s8  ;;  %p844_p12 = scmp.lt.s32.totalorder %s838_s8, %s838_s8 }
  0x3b   :  { %670 = vmatprep.subr.bf16.mxu0 %v871_v0  ;;  %v168_v20 = vld [vmem:[#allocation8 + $0x28] sm:$0xff]  ;;  %v677_v21 = vpack.c.bf16 %v71_v17, %v70_v16  ;;  %v72_v22 = vld [vmem:[#allocation6 + $0x40] sm:$0xff]  ;;  %v169_v25 = vld [vmem:[#allocation8 + $0x30] sm:$0xff] }
  0x3c   :  { %693 = vmatpush3.bf16.msra.mxu1 %v692_v15  ;;  %v73_v23 = vld [vmem:[#allocation6 + $0x48] sm:$0xff]  ;;  %v698_v24 = vpack.c.bf16 %v168_v20, %v167_v19  ;;  %v170_v26 = vld [vmem:[#allocation8 + $0x38] sm:$0xff]  ;;  %v74_v28 = vld [vmem:[#allocation6 + $0x50] sm:$0xff]  ;;  %p845_p13 = por %p844_p12, %p843_p11 }
  0x3d   :  { %694 = vmatprep.subr.bf16.mxu1 %v871_v0  ;;  %v680_v27 = vpack.c.bf16 %v73_v23, %v72_v22  ;;  %v75_v29 = vld [vmem:[#allocation6 + $0x58] sm:$0xff]  ;;  %v701_v30 = vpack.c.bf16 %v170_v26, %v169_v25  ;;  %v171_v31 = vld [vmem:[#allocation8 + $0x40] sm:$0xff]  ;;  %v172_v32 = vld [vmem:[#allocation8 + $0x48] sm:$0xff] }
  0x3e   :  { %672 = vmatpush3.bf16.msra.mxu0 %v671_v7  ;;  %v683_v33 = vpack.c.bf16 %v75_v29, %v74_v28  ;;  %v76_v34 = vld [vmem:[#allocation6 + $0x60] sm:$0xff]  ;;  %v77_v35 = vld [vmem:[#allocation6 + $0x68] sm:$0xff]  ;;  %v704_v36 = vpack.c.bf16 %v172_v32, %v171_v31  ;;  %v173_v37 = vld [vmem:[#allocation8 + $0x50] sm:$0xff]  ;;  %p846_p0 = pnand %p845_p13, %p839_p10 }
  0x3f   :  { %673 = vmatprep.subr.bf16.mxu0 %v871_v0  ;;  %v174_v38 = vld [vmem:[#allocation8 + $0x58] sm:$0xff]  ;;  %v686_v39 = vpack.c.bf16 %v77_v35, %v76_v34  ;;  %v78_v40 = vld [vmem:[#allocation6 + $0x70] sm:$0xff]  ;;  %v175_v43 = vld [vmem:[#allocation8 + $0x60] sm:$0xff] }
  0x40   :  { %696 = vmatpush3.bf16.msra.mxu1 %v695_v18  ;;  %v79_v41 = vld [vmem:[#allocation6 + $0x78] sm:$0xff]  ;;  %v707_v42 = vpack.c.bf16 %v174_v38, %v173_v37  ;;  %v176_v44 = vld [vmem:[#allocation8 + $0x68] sm:$0xff]  ;;  %v177_v48 = vld [vmem:[#allocation8 + $0x70] sm:$0xff] }
  0x41   :  { %697 = vmatprep.subr.bf16.mxu1 %v871_v0  ;;  %v689_v45 = vpack.c.bf16 %v79_v41, %v78_v40  ;;  %v710_v46 = vpack.c.bf16 %v176_v44, %v175_v43  ;;  %v63_v47 = vld [vmem:[#allocation3] sm:$0xff]  ;;  %v255_v51 = vld [vmem:[#allocation8 + $0x80] sm:$0xff]  ;;  %v256_v52 = vld [vmem:[#allocation8 + $0x88] sm:$0xff] }
  0x42   :  { %675 = vmatpush3.bf16.msra.mxu0 %v674_v14  ;;  %v178_v49 = vld [vmem:[#allocation8 + $0x78] sm:$0xff]  ;;  %v257_v53 = vld [vmem:[#allocation8 + $0x90] sm:$0xff]  ;;  %v716_v54 = vpack.c.bf16 %v256_v52, %v255_v51  ;;  %v259_v57 = vld [vmem:[#allocation8 + $0xa0] sm:$0xff] }
  0x43   :  { %676 = vmatprep.subr.bf16.mxu0 %v871_v0  ;;  %v713_v50 = vpack.c.bf16 %v178_v49, %v177_v48  ;;  %v258_v55 = vld [vmem:[#allocation8 + $0x98] sm:$0xff]  ;;  %v260_v58 = vld [vmem:[#allocation8 + $0xa8] sm:$0xff]  ;;  %v261_v60 = vld [vmem:[#allocation8 + $0xb0] sm:$0xff] }
  0x44   :  { %699 = vmatpush3.bf16.msra.mxu1 %v698_v24  ;;  %v719_v56 = vpack.c.bf16 %v258_v55, %v257_v53  ;;  %v722_v59 = vpack.c.bf16 %v260_v58, %v259_v57  ;;  %v262_v61 = vld [vmem:[#allocation8 + $0xb8] sm:$0xff]  ;;  %v263_v63 = vld [vmem:[#allocation8 + $0xc0] sm:$0xff]  ;;  %v264_v2 = vld [vmem:[#allocation8 + $0xc8] sm:$0xff] }
  0x45   :  { %700 = vmatprep.subr.bf16.mxu1 %v871_v0  ;;  %v725_v62 = vpack.c.bf16 %v262_v61, %v261_v60  ;;  %v728_v3 = vpack.c.bf16 %v264_v2, %v263_v63  ;;  %v265_v4 = vld [vmem:[#allocation8 + $0xd0] sm:$0xff]  ;;  %v266_v5 = vld [vmem:[#allocation8 + $0xd8] sm:$0xff]  ;;  %v267_v7 = vld [vmem:[#allocation8 + $0xe0] sm:$0xff] }
  0x46   :  { %678 = vmatpush3.bf16.msra.mxu0 %v677_v21  ;;  %v731_v6 = vpack.c.bf16 %v266_v5, %v265_v4  ;;  %v268_v8 = vld [vmem:[#allocation8 + $0xe8] sm:$0xff]  ;;  %v455_v10 = vld [vmem:[%s1009_s3] ss:$0 sm:$0xff]  ;;  %v269_v15 = vld [vmem:[#allocation8 + $0xf0] sm:$0xff] }
  0x47   :  { %679 = vmatprep.subr.bf16.mxu0 %v871_v0  ;;  %v734_v9 = vpack.c.bf16 %v268_v8, %v267_v7  ;;  %v270_v16 = vld [vmem:[#allocation8 + $0xf8] sm:$0xff]  ;;  %v347_v18 = vld [vmem:[#allocation8 + $0x100] sm:$0xff]  ;;  %v348_v19 = vld [vmem:[#allocation8 + $0x108] sm:$0xff] }
  0x48   :  { %702 = vmatpush3.bf16.msra.mxu1 %v701_v30  ;;  %v737_v17 = vpack.c.bf16 %v270_v16, %v269_v15  ;;  %v349_v20 = vld [vmem:[#allocation8 + $0x110] sm:$0xff]  ;;  %v740_v21 = vpack.c.bf16 %v348_v19, %v347_v18  ;;  %v350_v22 = vld [vmem:[#allocation8 + $0x118] sm:$0xff]  ;;  %v351_v24 = vld [vmem:[#allocation8 + $0x120] sm:$0xff] }
  0x49   :  { %703 = vmatprep.subr.bf16.mxu1 %v871_v0  ;;  %v743_v23 = vpack.c.bf16 %v350_v22, %v349_v20  ;;  %v352_v25 = vld [vmem:[#allocation8 + $0x128] sm:$0xff]  ;;  %v355_v29 = vld [vmem:[#allocation8 + $0x140] sm:$0xff]  ;;  %v357_v32 = vld [vmem:[#allocation8 + $0x150] sm:$0xff] }
  0x4a   :  { %681 = vmatpush3.bf16.msra.mxu0 %v680_v27  ;;  %v746_v26 = vpack.c.bf16 %v352_v25, %v351_v24  ;;  %v354_v27 = vld [vmem:[#allocation8 + $0x138] sm:$0xff]  ;;  %v356_v30 = vld [vmem:[#allocation8 + $0x148] sm:$0xff]  ;;  %v359_v35 = vld [vmem:[#allocation8 + $0x160] sm:$0xff] }
  0x4b   :  { %682 = vmatprep.subr.bf16.mxu0 %v871_v0  ;;  %v752_v31 = vpack.c.bf16 %v356_v30, %v355_v29  ;;  %v456_v38 = vld [vmem:[%s1009_s3 + $0x1] ss:$0 sm:$0xff]  ;;  %v361_v43 = vld [vmem:[#allocation8 + $0x170] sm:$0xff] }
  0x4c   :  { %705 = vmatpush3.bf16.msra.mxu1 %v704_v36  ;;  %v360_v36 = vld [vmem:[#allocation8 + $0x168] sm:$0xff]  ;;  %v362_v44 = vld [vmem:[#allocation8 + $0x178] sm:$0xff] }
  0x4d   :  { %706 = vmatprep.subr.bf16.mxu1 %v871_v0  ;;  %v758_v37 = vpack.c.bf16 %v360_v36, %v359_v35 }
  0x4e   :  { %684 = vmatpush3.bf16.msra.mxu0 %v683_v33  ;;  %v358_v33 = vld [vmem:[#allocation8 + $0x158] sm:$0xff] }
  0x4f   :  { %685 = vmatprep.subr.bf16.mxu0 %v871_v0  ;;  %v755_v34 = vpack.c.bf16 %v358_v33, %v357_v32 }
  0x50   :  { %708 = vmatpush3.bf16.msra.mxu1 %v707_v42 }
  0x51   :  { %709 = vmatprep.subr.bf16.mxu1 %v871_v0 }
  0x52   :  { %687 = vmatpush3.bf16.msra.mxu0 %v686_v39 }
  0x53   :  { %688 = vmatprep.subr.bf16.mxu0 %v871_v0 }
  0x54   :  { %711 = vmatpush3.bf16.msra.mxu1 %v710_v46  ;;  %v457_v46 = vld [vmem:[%s1009_s3 + $0x2] ss:$0 sm:$0xff] }
  0x55   :  { %712 = vmatprep.subr.bf16.mxu1 %v871_v0 }
  0x56   :  { %690 = vmatpush3.bf16.msra.mxu0 %v689_v45  ;;  %v761_v45 = vpack.c.bf16 %v362_v44, %v361_v43 }
  0x57   :  { %715 = vmatprep.subr.bf16.mxu0 %v871_v0 }
  0x58   :  { %714 = vmatpush3.bf16.msra.mxu1 %v713_v50  ;;  %v458_v50 = vld [vmem:[%s1009_s3 + $0x3] ss:$0 sm:$0xff] }
  0x59   :  { %560 = vmatmul.mubr.f32.vlgmr.msra.gmra.mrb[0].mxu0 %v63_v47  ;;  %739 = vmatprep.subr.bf16.mxu1 %v871_v0 }
  0x5a   :  { %629 = vmatprep.mubr.msk.f32.mxu0 %vm872_vm0, %v873_v1  ;;  %717 = vmatpush3.bf16.msra.mxu0 %v716_v54 }
  0x5b   :  { %718 = vmatprep.subr.bf16.mxu0 %v871_v0 }
  0x5e   :  { %720 = vmatpush3.bf16.msra.mxu0 %v719_v56 }
  0x5f   :  { %721 = vmatprep.subr.bf16.mxu0 %v871_v0 }
  0x62   :  { %723 = vmatpush3.bf16.msra.mxu0 %v722_v59 }
  0x63   :  { %724 = vmatprep.subr.bf16.mxu0 %v871_v0 }
  0x66   :  { %726 = vmatpush3.bf16.msra.mxu0 %v725_v62 }
  0x67   :  { %727 = vmatprep.subr.bf16.mxu0 %v871_v0 }
  0x6a   :  { %729 = vmatpush3.bf16.msra.mxu0 %v728_v3 }
  0x6b   :  { %730 = vmatprep.subr.bf16.mxu0 %v871_v0 }
  0x6e   :  { %732 = vmatpush3.bf16.msra.mxu0 %v731_v6 }
  0x6f   :  { %733 = vmatprep.subr.bf16.mxu0 %v871_v0 }
  0x72   :  { %735 = vmatpush3.bf16.msra.mxu0 %v734_v9 }
  0x73   :  { %736 = vmatprep.subr.bf16.mxu0 %v871_v0 }
  0x76   :  { %738 = vmatpush3.bf16.msra.mxu0 %v737_v17 }
 0x12c   :  { %v146_v11 = vpop.f32.mrb[0].mxu0 }
 0x12d   :  { %v161_v12 = vadd.f32 %v455_v10, %v146_v11  ;;  %v561_v13 = vpop.f32.mrb[1].mxu0 }
 0x12f   :  { %v162_v14 = vmax.f32 %v161_v12, 0.0 }
 0x131   :  { %595 = vmatmul.mubr.f32.vlgmr.msra.gmra.mrb[0].mxu1 %v162_v14 }
 0x132   :  { %664 = vmatprep.mubr.msk.f32.mxu1 %vm872_vm0, %v873_v1  ;;  %741 = vmatpush3.bf16.msra.mxu1 %v740_v21  ;;  %v353_v1 = vld [vmem:[#allocation8 + $0x130] sm:$0xff] }
 0x133   :  { %742 = vmatprep.subr.bf16.mxu1 %v871_v0  ;;  %v749_v28 = vpack.c.bf16 %v354_v27, %v353_v1 }
 0x136   :  { %744 = vmatpush3.bf16.msra.mxu1 %v743_v23 }
 0x137   :  { %745 = vmatprep.subr.bf16.mxu1 %v871_v0 }
 0x13a   :  { %747 = vmatpush3.bf16.msra.mxu1 %v746_v26 }
 0x13b   :  { %748 = vmatprep.subr.bf16.mxu1 %v871_v0 }
 0x13e   :  { %750 = vmatpush3.bf16.msra.mxu1 %v749_v28 }
 0x13f   :  { %751 = vmatprep.subr.bf16.mxu1 %v871_v0 }
 0x142   :  { %753 = vmatpush3.bf16.msra.mxu1 %v752_v31 }
 0x143   :  { %754 = vmatprep.subr.bf16.mxu1 %v871_v0 }
 0x146   :  { %756 = vmatpush3.bf16.msra.mxu1 %v755_v34 }
 0x147   :  { %757 = vmatprep.subr.bf16.mxu1 %v871_v0 }
 0x14a   :  { %759 = vmatpush3.bf16.msra.mxu1 %v758_v37 }
 0x14b   :  { %760 = vmatprep.subr.bf16.mxu1 %v871_v0 }
 0x14e   :  { %762 = vmatpush3.bf16.msra.mxu1 %v761_v45 }
 0x204   :  { %v250_v39 = vpop.f32.mrb[0].mxu1 }
 0x205   :  { %v251_v40 = vadd.f32 %v456_v38, %v250_v39  ;;  %v596_v41 = vpop.f32.mrb[1].mxu1 }
 0x207   :  { %v254_v42 = vmax.f32 %v251_v40, 0.0 }
 0x209   :  { %630 = vmatmul.mubr.f32.vlgmr.msra.gmra.mrb[2].mxu0 %v254_v42 }
 0x2dc   :  { %v342_v47 = vpop.f32.mrb[2].mxu0 }
 0x2dd   :  { %v343_v48 = vadd.f32 %v457_v46, %v342_v47  ;;  %v631_v0 = vpop.f32.mrb[3].mxu0 }
 0x2df   :  { %v346_v49 = vmax.f32 %v343_v48, 0.0 }
 0x2e1   :  { %665 = vmatmul.mubr.f32.vlgmr.msra.gmra.mrb[2].mxu1 %v346_v49 }
 0x3b4   :  { %v434_v51 = vpop.f32.mrb[2].mxu1 }
 0x3b5   :  { %v435_v52 = vadd.f32 %v458_v50, %v434_v51  ;;  %v666_v53 = vpop.f32.mrb[3].mxu1 }
 0x3b7   :  { %438 = vst [vmem:[#allocation9] sm:$0xff] %v435_v52 }
 0x3b8   :  { %849 = shalt.err (!%p846_p0)
}
 0x3b9   :  { %s850_s11 = scalar_lea.hbm %s1010_s4, 128 }
 0x3ba   :  { %p851_p1 = scmp.ne.s32.totalorder %s1010_s4, %s850_s11  ;;  %p854_p2 = scmp.lt.u32.totalorder %s850_s11, %s1010_s4 }
 0x3bc   :  { %p856_p3 = pnand %p854_p2, %p851_p1 }
 0x3be   :  { %859 = shalt.err (!%p856_p3)
}
 0x3bf   :  { %448 = dma.vmem_to_hbm [thread:$0]  %s446_s7, 128, %s1010_s4, [#allocation5]  }
 0x3c0   :  { %864 = dma.done.wait [#allocation5], 128  }
 0x3c1   :  { %865 = vsyncadd [#allocation5], 4294967168 }
 0x3c2   :  { %452 = vsyncpa [#allocation4], 1 }
 0x3c3   :  { %453 = vsyncpa [#allocation7], 1 }
 0x3c4   :  { %454 = vsyncpa [#allocation5], 1 }

</bundles_post_ra>
